<compile_context>
chip_gen: v7x
topology: tpu7x:2x2x1
jax: 0.10.0
libtpu: 0.0.40
codegen_flags: <defaults>
</compile_context>

<pallas_src>
import jax
import jax.numpy as jnp
from jax.experimental import pallas as pl
from jax.experimental.pallas import tpu as pltpu

HIDDEN_SIZE = 50
INPUT_SIZE = 784      # 28 * 28 * 1  (PneumoMNIST)
NUM_CLASSES = 2


def _round_up(x, m):
    return (x + m - 1) // m * m


def _cdiv(a, b):
    return -(-a // b)


def _mlp_kernel(x_ref, w1_ref, b1_ref, w2_ref, o_ref):
    # Cast the f32 activation tile to bf16 on the VPU (plenty of slack there);
    # fc1 runs on the bf16 MXU path with f32 accumulation.
    x_bf = x_ref[...].astype(jnp.bfloat16)
    h = jnp.dot(x_bf, w1_ref[...], preferred_element_type=jnp.float32)
    # bias + ReLU in f32 on the VPU.  Lane `hidden` of b1 is 1.0 (its w1 column
    # is zero), so h[:, hidden] == 1 after ReLU and carries the fc2 bias below.
    h = jnp.maximum(h + b1_ref[...], 0.0)
    # fc2: bf16 MXU, f32 acc; b2 is already folded into w2_p's ones-lane row.
    logits = jnp.dot(h.astype(jnp.bfloat16), w2_ref[...],
                     preferred_element_type=jnp.float32)
    o_ref[...] = logits.astype(o_ref.dtype)   # bf16 lane-dense store


def prepare_params(w1, b1, w2, b2):
    """Pad / cast parameters once (hoisted out of the per-call forward).

    w1 : [input_size, hidden_size]   (transposed vs. torch fc1.weight)
    b1 : [hidden_size]
    w2 : [hidden_size, num_classes]  (transposed vs. torch fc2.weight)
    b2 : [num_classes]
    """
    d_in, hidden = w1.shape
    n_cls = w2.shape[1]
    h_pad = _round_up(hidden + 1, 128)   # +1 lane carries the fc2 bias
    c_pad = _round_up(n_cls, 128)

    w1_p = jnp.zeros((d_in, h_pad), jnp.bfloat16).at[:, :hidden].set(
        w1.astype(jnp.bfloat16))
    b1_p = jnp.zeros((1, h_pad), jnp.float32).at[0, :hidden].set(
        b1.astype(jnp.float32))
    b1_p = b1_p.at[0, hidden].set(1.0)   # ones-lane -> fc2 bias rides through ReLU
    w2_p = jnp.zeros((h_pad, c_pad), jnp.bfloat16).at[:hidden, :n_cls].set(
        w2.astype(jnp.bfloat16))
    w2_p = w2_p.at[hidden, :n_cls].set(b2.astype(jnp.bfloat16))
    return w1_p, b1_p, w2_p, n_cls


def fully_connected_forward(x, w1_p, b1_p, w2_p, n_cls, *, block_b=2048):
    """Pallas implementation of FullyConnected.forward.

    x : [B, C, H, W] float32 (NCHW, like PyTorch).  Returns [B, n_cls] float32.
    """
    B = x.shape[0]
    d_in, h_pad = w1_p.shape
    c_pad = w2_p.shape[1]

    # nn.Flatten(); stays f32 — the bf16 cast happens inside the kernel.
    x_flat = x.reshape(B, -1)
    assert x_flat.shape[1] == d_in

    # Tile-count heuristic: amortize the ~0.35us/step overhead with big tiles,
    # keep batch-padding waste small, and give v7x's 2nd TensorCore work when
    # the batch is large (the grid axis is "parallel").
    n_tiles = max(_cdiv(B, block_b), 1)
    if B >= 1024:
        n_tiles = max(n_tiles, 2)
    tb = _round_up(_cdiv(B, n_tiles), 8)
    n_tiles = _cdiv(B, tb)
    b_pad = n_tiles * tb
    if b_pad != B:
        x_flat = jnp.pad(x_flat, ((0, b_pad - B), (0, 0)))

    out_padded = pl.pallas_call(
        _mlp_kernel,
        out_shape=jax.ShapeDtypeStruct((b_pad, c_pad), jnp.bfloat16),
        grid_spec=pl.GridSpec(
            grid=(n_tiles,),
            in_specs=[
                pl.BlockSpec((tb, d_in), lambda i: (i, 0)),      # x tile streams (f32)
                pl.BlockSpec((d_in, h_pad), lambda i: (0, 0)),   # w1 resident (bf16)
                pl.BlockSpec((1, h_pad), lambda i: (0, 0)),      # b1 resident (f32)
                pl.BlockSpec((h_pad, c_pad), lambda i: (0, 0)),  # w2 resident (bf16)
            ],
            out_specs=pl.BlockSpec((tb, c_pad), lambda i: (i, 0)),
        ),
        compiler_params=pltpu.CompilerParams(
            dimension_semantics=("parallel",),
            vmem_limit_bytes=48 << 20),   # big tiles exceed v5e's 16 MiB default
    )(x_flat, w1_p, b1_p, w2_p)

    # Slice live rows/classes; cast the bf16 logits back to f32 (tiny, plain JAX).
    return out_padded[:B, :n_cls].astype(jnp.float32)


def init_params(key, input_size, hidden_size, num_classes):
    """Deterministic init mimicking torch.nn.Linear default (U[-1/sqrt(fan_in), +])."""
    k1, k2, k3, k4 = jax.random.split(key, 4)
    bound1 = 1.0 / jnp.sqrt(input_size)
    bound2 = 1.0 / jnp.sqrt(hidden_size)
    w1 = jax.random.uniform(k1, (input_size, hidden_size), jnp.float32,
                            -bound1, bound1)
    b1 = jax.random.uniform(k2, (hidden_size,), jnp.float32, -bound1, bound1)
    w2 = jax.random.uniform(k3, (hidden_size, num_classes), jnp.float32,
                            -bound2, bound2)
    b2 = jax.random.uniform(k4, (num_classes,), jnp.float32, -bound2, bound2)
    return w1, b1, w2, b2


if __name__ == "__main__":
    key = jax.random.PRNGKey(0)
    kx, kp = jax.random.split(key)

    B = 4
    # PneumoMNIST images: 1 channel, 28x28 -> flatten to 784
    x = jax.random.normal(kx, (B, 1, 28, 28), jnp.float32)
    w1, b1, w2, b2 = init_params(kp, INPUT_SIZE, HIDDEN_SIZE, NUM_CLASSES)

    # Pad / cast weights once (not per call).
    w1_p, b1_p, w2_p, n_cls = prepare_params(w1, b1, w2, b2)

    out = fully_connected_forward(x, w1_p, b1_p, w2_p, n_cls)
    out = jax.block_until_ready(out)
    assert out.shape == (B, NUM_CLASSES)

    x_flat = x.reshape(B, -1)

    # Reference 1: dtype-matched to the kernel pipeline (bf16 fc1/fc2 inputs,
    # f32 accumulation, bf16 final store) -> tight tolerance.
    h_ref = jnp.maximum(
        jnp.dot(x_flat.astype(jnp.bfloat16), w1.astype(jnp.bfloat16),
                preferred_element_type=jnp.float32) + b1, 0.0)
    logits_ref = jnp.dot(h_ref.astype(jnp.bfloat16), w2.astype(jnp.bfloat16),
                         preferred_element_type=jnp.float32)
    logits_ref = logits_ref + b2.astype(jnp.bfloat16).astype(jnp.float32)
    ref_bf = logits_ref.astype(jnp.bfloat16).astype(jnp.float32)
    assert jnp.allclose(out, ref_bf, atol=1e-2, rtol=1e-2), \
        "mismatch vs bf16-matched reference"

    # Reference 2: full f32 reference -> loose tolerance for the bf16 paths.
    ref_f32 = jnp.maximum(x_flat @ w1 + b1, 0.0) @ w2 + b2
    assert jnp.allclose(out, ref_f32, atol=5e-2, rtol=5e-2), \
        "mismatch vs f32 reference"

    print("KERNEL_OK")
</pallas_src>

<mosaic_0001>
module attributes {stable_mosaic.version = 11 : i64} {
  func.func @_mlp_kernel(%arg0: i32, %arg1: memref<8x784xf32, #tpu.memory_space<vmem>>, %arg2: memref<784x128xbf16, #tpu.memory_space<vmem>>, %arg3: memref<1x128xf32, #tpu.memory_space<vmem>>, %arg4: memref<128x128xbf16, #tpu.memory_space<vmem>>, %arg5: memref<8x128xbf16, #tpu.memory_space<vmem>>) attributes {dimension_semantics = [#tpu.dimension_semantics<parallel>], iteration_bounds = array<i64: 1>, scalar_prefetch = 0 : i64, scratch_operands = 0 : i64, tpu.core_type = #tpu.core_type<tc>, window_params = [{transform_indices = @transform_0, window_bounds = array<i64: 8, 784>}, {pipeline_mode = #tpu.pipeline_mode<synchronous>, transform_indices = @transform_1, window_bounds = array<i64: 784, 128>}, {pipeline_mode = #tpu.pipeline_mode<synchronous>, transform_indices = @transform_2, window_bounds = array<i64: 1, 128>}, {pipeline_mode = #tpu.pipeline_mode<synchronous>, transform_indices = @transform_3, window_bounds = array<i64: 128, 128>}, {transform_indices = @transform_4, window_bounds = array<i64: 8, 128>}]} {
    %c0 = arith.constant 0 : index
    %c0_0 = arith.constant 0 : index
    %0 = vector.load %arg1[%c0, %c0_0] : memref<8x784xf32, #tpu.memory_space<vmem>>, vector<8x784xf32>
    %1 = arith.truncf %0 : vector<8x784xf32> to vector<8x784xbf16>
    %c0_1 = arith.constant 0 : index
    %c0_2 = arith.constant 0 : index
    %2 = vector.load %arg2[%c0_1, %c0_2] : memref<784x128xbf16, #tpu.memory_space<vmem>>, vector<784x128xbf16>
    %cst = arith.constant dense<0.000000e+00> : vector<8x128xf32>
    %3 = tpu.matmul %1, %2, %cst {dimension_numbers = #tpu.dot_dimension_numbers<[1], [0], [0], [1], [0, 0, 1, 1], [], []>} : vector<8x784xbf16>, vector<784x128xbf16>, vector<8x128xf32> -> vector<8x128xf32>
    %c0_3 = arith.constant 0 : index
    %c0_4 = arith.constant 0 : index
    %4 = vector.load %arg3[%c0_3, %c0_4] : memref<1x128xf32, #tpu.memory_space<vmem>>, vector<1x128xf32>
    %5 = vector.broadcast %4 : vector<1x128xf32> to vector<8x128xf32>
    %6 = arith.addf %3, %5 : vector<8x128xf32>
    %cst_5 = arith.constant 0.000000e+00 : f32
    %7 = vector.broadcast %cst_5 : f32 to vector<8x128xf32>
    %8 = arith.maximumf %6, %7 : vector<8x128xf32>
    %9 = arith.truncf %8 : vector<8x128xf32> to vector<8x128xbf16>
    %c0_6 = arith.constant 0 : index
    %c0_7 = arith.constant 0 : index
    %10 = vector.load %arg4[%c0_6, %c0_7] : memref<128x128xbf16, #tpu.memory_space<vmem>>, vector<128x128xbf16>
    %cst_8 = arith.constant dense<0.000000e+00> : vector<8x128xf32>
    %11 = tpu.matmul %9, %10, %cst_8 {dimension_numbers = #tpu.dot_dimension_numbers<[1], [0], [0], [1], [0, 0, 1, 1], [], []>} : vector<8x128xbf16>, vector<128x128xbf16>, vector<8x128xf32> -> vector<8x128xf32>
    %12 = arith.truncf %11 : vector<8x128xf32> to vector<8x128xbf16>
    %c0_9 = arith.constant 0 : index
    %c0_10 = arith.constant 0 : index
    %13 = vector.load %arg5[%c0_9, %c0_10] : memref<8x128xbf16, #tpu.memory_space<vmem>>, vector<8x128xbf16>
    tpu.vector_store %arg5[%c0_9, %c0_10], %12 {strides = array<i32>} : memref<8x128xbf16, #tpu.memory_space<vmem>>, vector<8x128xbf16>,
    return
  }
  func.func @transform_0(%arg0: i32) -> (i32, i32) {
    %c0_i32 = arith.constant 0 : i32
    %c0_i32_0 = arith.constant 0 : i32
    return %arg0, %c0_i32 : i32, i32
  }
  func.func @transform_1(%arg0: i32) -> (i32, i32) {
    %c0_i32 = arith.constant 0 : i32
    %c0_i32_0 = arith.constant 0 : i32
    %c0_i32_1 = arith.constant 0 : i32
    return %c0_i32, %c0_i32_0 : i32, i32
  }
  func.func @transform_2(%arg0: i32) -> (i32, i32) {
    %c0_i32 = arith.constant 0 : i32
    %c0_i32_0 = arith.constant 0 : i32
    %c0_i32_1 = arith.constant 0 : i32
    return %c0_i32, %c0_i32_0 : i32, i32
  }
  func.func @transform_3(%arg0: i32) -> (i32, i32) {
    %c0_i32 = arith.constant 0 : i32
    %c0_i32_0 = arith.constant 0 : i32
    %c0_i32_1 = arith.constant 0 : i32
    return %c0_i32, %c0_i32_0 : i32, i32
  }
  func.func @transform_4(%arg0: i32) -> (i32, i32) {
    %c0_i32 = arith.constant 0 : i32
    %c0_i32_0 = arith.constant 0 : i32
    return %arg0, %c0_i32 : i32, i32
  }
}

</mosaic_0001>

<bundles_post_ra>
// kernel: tpu_custom_call.1
= control target key start
LH: loop header
LB: loop body
LE: loop exit
PB: predicated region body
PF: predicated region fallthrough
CT: control target
= control target key end

     0   :  { %9 = vsyncpa [#allocation3], 0  ;;  %s1183_s0 = inlined_call_operand.hbm [shape: f32[8,784], index: 0, kind: input, shape index: {}]   ;;  %s1184_s1 = inlined_call_operand.hbm [shape: bf16[784,128], index: 1, kind: input, shape index: {}]   ;;  %s1185_s2 = inlined_call_operand.vmem [shape: f32[1,128], index: 2, kind: input, shape index: {}]   ;;  %s1186_s3 = inlined_call_operand.hbm [shape: bf16[128,128], index: 3, kind: input, shape index: {}]   ;;  %s1187_s4 = inlined_call_operand.hbm [shape: bf16[8,128], index: 4, kind: output, shape index: {}]  }
   0x1   :  { %10 = vsyncpa [#allocation6], 0 }
   0x2   :  { %11 = vsyncpa [#allocation4], 0  ;;  %s1080_s15 = smov [#allocation5]   ;;  %s986_s19 = scalar_lea.hbm %s1184_s1, 6272 }
   0x3   :  { %s27_s16 = sshll.u32 %s1080_s15, 4  ;;  %p987_p0 = scmp.ne.s32.totalorder %s1184_s1, %s986_s19  ;;  %s28_s16 = int_to_ptr.vmem [resolvable:$true] %s27_s16 }
   0x4   :  { %p990_p1 = scmp.lt.u32.totalorder %s986_s19, %s1184_s1 }
   0x6   :  { %p992_p2 = pnand %p990_p1, %p987_p0 }
   0x8   :  { %995 = shalt.err (!%p992_p2)
}
   0x9   :  { %s996_s24 = scalar_lea.vmem %s28_s16, 6272  ;;  %p1001_p4 = scmp.lt.s32.totalorder %s28_s16, %s28_s16 }
   0xa   :  { %p997_p3 = scmp.ne.s32.totalorder %s28_s16, %s996_s24  ;;  %p1002_p5 = scmp.lt.s32.totalorder %s996_s24, %s996_s24 }
   0xc   :  { %p1003_p6 = por %p1002_p5, %p1001_p4 }
   0xe   :  { %p1004_p7 = pnand %p1003_p6, %p997_p3 }
  0x10   :  { %1007 = shalt.err (!%p1004_p7)
}
  0x11   :  { %s1081_s25 = smov 64   ;;  %s1082_s26 = smov 4  }
  0x12   :  { %33 = dma.hbm_to_vmem [thread:$0]  %s1184_s1, 6272, %s28_s16, [#allocation6], %s1081_s25, %s1081_s25, %s1082_s26  }
  0x13   :  { %s1083_s29 = smov [#allocation2]   ;;  %s1084_s5 = smov [#allocation7]  }
  0x14   :  { %s18_s30 = sshll.u32 %s1083_s29, 4  ;;  %s41_s6 = sshll.u32 %s1084_s5, 4  ;;  %s19_s30 = int_to_ptr.vmem [resolvable:$true] %s18_s30  ;;  %s42_s6 = int_to_ptr.vmem [resolvable:$true] %s41_s6 }
  0x15   :  { %s1008_s9 = scalar_lea.hbm %s1183_s0, 896 }
  0x16   :  { %p1009_p8 = scmp.ne.s32.totalorder %s1183_s0, %s1008_s9  ;;  %p1012_p9 = scmp.lt.u32.totalorder %s1008_s9, %s1183_s0 }
  0x18   :  { %p1014_p10 = pnand %p1012_p9, %p1009_p8 }
  0x1a   :  { %1017 = shalt.err (!%p1014_p10)
}
  0x1b   :  { %s1018_s1 = scalar_lea.vmem %s19_s30, 896  ;;  %p1023_p12 = scmp.lt.s32.totalorder %s19_s30, %s19_s30 }
  0x1c   :  { %p1019_p11 = scmp.ne.s32.totalorder %s19_s30, %s1018_s1  ;;  %p1024_p13 = scmp.lt.s32.totalorder %s1018_s1, %s1018_s1 }
  0x1e   :  { %p1025_p0 = por %p1024_p13, %p1023_p12 }
  0x20   :  { %p1026_p1 = pnand %p1025_p0, %p1019_p11 }
  0x22   :  { %1029 = shalt.err (!%p1026_p1)
}
  0x23   :  { %21 = dma.hbm_to_vmem [thread:$0]  %s1183_s0, 896, %s19_s30, [#allocation3]  }
  0x24   :  { %s1030_s18 = scalar_lea.hbm %s1186_s3, 1024 }
  0x25   :  { %p1031_p2 = scmp.ne.s32.totalorder %s1186_s3, %s1030_s18  ;;  %p1034_p3 = scmp.lt.u32.totalorder %s1030_s18, %s1186_s3 }
  0x27   :  { %p1036_p4 = pnand %p1034_p3, %p1031_p2 }
  0x29   :  { %1039 = shalt.err (!%p1036_p4)
}
  0x2a   :  { %s1040_s23 = scalar_lea.vmem %s42_s6, 1024  ;;  %p1045_p6 = scmp.lt.s32.totalorder %s42_s6, %s42_s6 }
  0x2b   :  { %p1041_p5 = scmp.ne.s32.totalorder %s42_s6, %s1040_s23  ;;  %p1046_p7 = scmp.lt.s32.totalorder %s1040_s23, %s1040_s23 }
  0x2d   :  { %p1047_p8 = por %p1046_p7, %p1045_p6 }
  0x2f   :  { %p1048_p9 = pnand %p1047_p8, %p1041_p5 }
  0x31   :  { %1051 = shalt.err (!%p1048_p9)
}
  0x32   :  { %47 = dma.hbm_to_vmem [thread:$0]  %s1186_s3, 1024, %s42_s6, [#allocation6], %s1081_s25, %s1081_s25, %s1082_s26  }
  0x33   :  { %1074 = dma.done.wait [#allocation3], 896  }
  0x34   :  { %1075 = vsyncadd [#allocation3], 4294966400 }
  0x35   :  { %1076 = dma.done.wait [#allocation6], 7296  }
  0x36   :  { %1077 = vsyncadd [#allocation6], 4294960000  ;;  %v929_v0 = vld [vmem:[#allocation5 + $0x40] sm:$0xff]   ;;  %v933_v4 = vld [vmem:[#allocation5 + $0x48] sm:$0xff]   ;;  %v1085_v44 = vmov 0.0   ;;  %vm1086_vm0 = vmmov 0  }
  0x37   :  { %v930_v1 = vld [vmem:[#allocation5] sm:$0xff]   ;;  %818 = vmatprep.subr.bf16.mxu0 %v929_v0  ;;  %v934_v5 = vld [vmem:[#allocation5 + $0x8] sm:$0xff]   ;;  %v937_v8 = vld [vmem:[#allocation5 + $0x50] sm:$0xff]   ;;  %vm471_vm1 = vcmask 130048  }
  0x38   :  { %v931_v2 = vld [vmem:[#allocation5 + $0xc0] sm:$0xff]   ;;  %819 = vmatpush3.bf16.msra.mxu0 %v930_v1  ;;  %v935_v6 = vld [vmem:[#allocation5 + $0xc8] sm:$0xff]   ;;  %v938_v9 = vld [vmem:[#allocation5 + $0x10] sm:$0xff]  }
  0x39   :  { %v932_v3 = vld [vmem:[#allocation5 + $0x80] sm:$0xff]   ;;  %840 = vmatprep.subr.bf16.mxu1 %v931_v2  ;;  %820 = vmatprep.subr.bf16.mxu0 %v933_v4  ;;  %v936_v7 = vld [vmem:[#allocation5 + $0x88] sm:$0xff]   ;;  %v939_v10 = vld [vmem:[#allocation5 + $0xd0] sm:$0xff]  }
  0x3a   :  { %841 = vmatpush3.bf16.msra.mxu1 %v932_v3  ;;  %v940_v11 = vld [vmem:[#allocation5 + $0x90] sm:$0xff]   ;;  %v941_v12 = vld [vmem:[#allocation5 + $0x58] sm:$0xff]   ;;  %v945_v16 = vld [vmem:[#allocation5 + $0x60] sm:$0xff]  }
  0x3b   :  { %842 = vmatprep.subr.bf16.mxu1 %v935_v6  ;;  %v942_v13 = vld [vmem:[#allocation5 + $0x18] sm:$0xff]   ;;  %v946_v17 = vld [vmem:[#allocation5 + $0x20] sm:$0xff]   ;;  %v949_v20 = vld [vmem:[#allocation5 + $0x68] sm:$0xff]  }
  0x3c   :  { %821 = vmatpush3.bf16.msra.mxu0 %v934_v5  ;;  %v943_v14 = vld [vmem:[#allocation5 + $0xd8] sm:$0xff]   ;;  %v947_v18 = vld [vmem:[#allocation5 + $0xe0] sm:$0xff]   ;;  %v950_v21 = vld [vmem:[#allocation5 + $0x28] sm:$0xff]  }
  0x3d   :  { %822 = vmatprep.subr.bf16.mxu0 %v937_v8  ;;  %v944_v15 = vld [vmem:[#allocation5 + $0x98] sm:$0xff]   ;;  %v948_v19 = vld [vmem:[#allocation5 + $0xa0] sm:$0xff]   ;;  %v951_v22 = vld [vmem:[#allocation5 + $0xe8] sm:$0xff]  }
  0x3e   :  { %843 = vmatpush3.bf16.msra.mxu1 %v936_v7  ;;  %v952_v23 = vld [vmem:[#allocation5 + $0xa8] sm:$0xff]   ;;  %v953_v24 = vld [vmem:[#allocation5 + $0x70] sm:$0xff]   ;;  %v957_v28 = vld [vmem:[#allocation5 + $0x78] sm:$0xff]  }
  0x3f   :  { %844 = vmatprep.subr.bf16.mxu1 %v939_v10  ;;  %v954_v25 = vld [vmem:[#allocation5 + $0x30] sm:$0xff]   ;;  %v958_v29 = vld [vmem:[#allocation5 + $0x38] sm:$0xff]   ;;  %v58_v34 = vld [vmem:[#allocation2] sm:$0xff] }
  0x40   :  { %823 = vmatpush3.bf16.msra.mxu0 %v938_v9  ;;  %v955_v26 = vld [vmem:[#allocation5 + $0xf0] sm:$0xff]   ;;  %v959_v30 = vld [vmem:[#allocation5 + $0xf8] sm:$0xff]   ;;  %v65_v35 = vpack.c.bf16 %v58_v34, %v58_v34  ;;  %v961_v36 = vld [vmem:[#allocation5 + $0x140] sm:$0xff]  }
  0x41   :  { %824 = vmatprep.subr.bf16.mxu0 %v941_v12  ;;  %v956_v27 = vld [vmem:[#allocation5 + $0xb0] sm:$0xff]   ;;  %v960_v33 = vld [vmem:[#allocation5 + $0xb8] sm:$0xff]   ;;  %v61_v37 = vld [vmem:[#allocation2 + $0x18] sm:$0xff] }
  0x42   :  { %845 = vmatpush3.bf16.msra.mxu1 %v940_v11  ;;  %v59_v31 = vld [vmem:[#allocation2 + $0x8] sm:$0xff]  ;;  %v68_v38 = vpack.c.bf16 %v61_v37, %v61_v37  ;;  %v962_v39 = vld [vmem:[#allocation5 + $0x100] sm:$0xff]   ;;  %v60_v40 = vld [vmem:[#allocation2 + $0x10] sm:$0xff] }
  0x43   :  { %846 = vmatprep.subr.bf16.mxu1 %v943_v14  ;;  %v66_v32 = vpack.c.bf16 %v59_v31, %v59_v31  ;;  %v67_v41 = vpack.c.bf16 %v60_v40, %v60_v40  ;;  %v963_v42 = vld [vmem:[#allocation5 + $0x148] sm:$0xff]   ;;  %v965_v45 = vld [vmem:[#allocation5 + $0x150] sm:$0xff]   ;;  %v967_v47 = vld [vmem:[#allocation5 + $0x158] sm:$0xff]  }
  0x44   :  { %825 = vmatpush3.bf16.msra.mxu0 %v942_v13  ;;  %547 = vmatprep.mubr.bf16.mxu1 %v68_v38  ;;  %v964_v43 = vld [vmem:[#allocation5 + $0x108] sm:$0xff]   ;;  %v966_v46 = vld [vmem:[#allocation5 + $0x110] sm:$0xff]   ;;  %v968_v48 = vld [vmem:[#allocation5 + $0x118] sm:$0xff]  }
  0x45   :  { %826 = vmatprep.subr.bf16.mxu0 %v945_v16  ;;  %507 = vmatprep.mubr.bf16.mxu0 %v66_v32  ;;  %v969_v49 = vld [vmem:[#allocation5 + $0x160] sm:$0xff]   ;;  %v971_v51 = vld [vmem:[#allocation5 + $0x168] sm:$0xff]   ;;  %v63_v54 = vld [vmem:[#allocation2 + $0x28] sm:$0xff] }
  0x46   :  { %847 = vmatpush3.bf16.msra.mxu1 %v944_v15  ;;  %v970_v50 = vld [vmem:[#allocation5 + $0x120] sm:$0xff]   ;;  %v972_v52 = vld [vmem:[#allocation5 + $0x128] sm:$0xff]   ;;  %v973_v55 = vld [vmem:[#allocation5 + $0x170] sm:$0xff]   ;;  %v70_v56 = vpack.c.bf16 %v63_v54, %v63_v54 }
  0x47   :  { %848 = vmatprep.subr.bf16.mxu1 %v947_v18  ;;  %v977_v53 = vld [vmem:[#allocation5 + $0x180] sm:$0xff]   ;;  %v64_v57 = vld [vmem:[#allocation2 + $0x30] sm:$0xff]  ;;  %v974_v59 = vld [vmem:[#allocation5 + $0x130] sm:$0xff]  }
  0x48   :  { %827 = vmatpush3.bf16.msra.mxu0 %v946_v17  ;;  %v71_v58 = vpack.c.bf16 %v64_v57, %v64_v57  ;;  %v975_v60 = vld [vmem:[#allocation5 + $0x178] sm:$0xff]   ;;  %v62_v62 = vld [vmem:[#allocation2 + $0x20] sm:$0xff]  ;;  %v979_v1 = vld [vmem:[#allocation7 + $0x8] sm:$0xff]  }
  0x49   :  { %828 = vmatprep.subr.bf16.mxu0 %v949_v20  ;;  %v976_v61 = vld [vmem:[#allocation5 + $0x138] sm:$0xff]   ;;  %v69_v63 = vpack.c.bf16 %v62_v62, %v62_v62  ;;  %v978_v0 = vld [vmem:[#allocation7] sm:$0xff]   ;;  %v981_v3 = vld [vmem:[#allocation7 + $0x18] sm:$0xff]  }
  0x4a   :  { %849 = vmatpush3.bf16.msra.mxu1 %v948_v19  ;;  %v980_v2 = vld [vmem:[#allocation7 + $0x10] sm:$0xff]   ;;  %v982_v4 = vld [vmem:[#allocation7 + $0x20] sm:$0xff]   ;;  %v983_v5 = vld [vmem:[#allocation7 + $0x28] sm:$0xff]  }
  0x4b   :  { %850 = vmatprep.subr.bf16.mxu1 %v951_v22  ;;  %v984_v6 = vld [vmem:[#allocation7 + $0x30] sm:$0xff]   ;;  %v985_v7 = vld [vmem:[#allocation7 + $0x38] sm:$0xff]   ;;  %v759_v9 = vld [vmem:[%s1185_s2] ss:$0 sm:$0xff]  ;;  %s1087_s2 = smov [#allocation8]  }
  0x4c   :  { %829 = vmatpush3.bf16.msra.mxu0 %v950_v21  ;;  %s749_s26 = sshll.u32 %s1087_s2, 4  ;;  %s750_s26 = int_to_ptr.vmem [resolvable:$true] %s749_s26 }
  0x4d   :  { %830 = vmatprep.subr.bf16.mxu0 %v953_v24  ;;  %s1052_s27 = scalar_lea.vmem %s750_s26, 64  ;;  %p1057_p11 = scmp.lt.s32.totalorder %s750_s26, %s750_s26 }
  0x4e   :  { %851 = vmatpush3.bf16.msra.mxu1 %v952_v23  ;;  %p1053_p10 = scmp.ne.s32.totalorder %s750_s26, %s1052_s27  ;;  %p1058_p12 = scmp.lt.s32.totalorder %s1052_s27, %s1052_s27 }
  0x4f   :  { %852 = vmatprep.subr.bf16.mxu1 %v955_v26 }
  0x50   :  { %831 = vmatpush3.bf16.msra.mxu0 %v954_v25  ;;  %p1059_p13 = por %p1058_p12, %p1057_p11 }
  0x51   :  { %832 = vmatprep.subr.bf16.mxu0 %v957_v28 }
  0x52   :  { %853 = vmatpush3.bf16.msra.mxu1 %v956_v27  ;;  %p1060_p0 = pnand %p1059_p13, %p1053_p10 }
  0x53   :  { %854 = vmatprep.subr.bf16.mxu1 %v959_v30 }
  0x54   :  { %833 = vmatpush3.bf16.msra.mxu0 %v958_v29 }
  0x55   :  { %862 = vmatprep.subr.bf16.mxu0 %v961_v36 }
  0x56   :  { %855 = vmatpush3.bf16.msra.mxu1 %v960_v33 }
  0x57   :  { %508 = vmatmul.mubr.bf16.vlgmr.msra.gmra.mrb[0].mxu0 %v65_v35  ;;  %895 = vmatprep.subr.bf16.mxu1 %v1085_v44 }
  0x58   :  { %863 = vmatpush3.bf16.msra.mxu0 %v962_v39  ;;  %587 = vmatprep.mubr.bf16.mxu0 %v70_v56 }
  0x59   :  { %548 = vmatmul.mubr.bf16.vlgmr.msra.gmra.mrb[0].mxu1 %v67_v41  ;;  %864 = vmatprep.subr.bf16.mxu0 %v963_v42 }
  0x5a   :  { %897 = vmatprep.mubr.msk.bf16.mxu1 %vm1086_vm0, %v1085_v44  ;;  %896 = vmatpush3.bf16.msra.mxu1 %v977_v53 }
  0x5b   :  { %901 = vmatprep.subr.bf16.mxu1 %v1085_v44 }
  0x5c   :  { %865 = vmatpush3.bf16.msra.mxu0 %v964_v43 }
  0x5d   :  { %866 = vmatprep.subr.bf16.mxu0 %v965_v45 }
  0x60   :  { %867 = vmatpush3.bf16.msra.mxu0 %v966_v46 }
  0x61   :  { %868 = vmatprep.subr.bf16.mxu0 %v967_v47  ;;  %898 = vmatmul.mubr.msk.bf16.vlgmr.msra.gmra.mrb[4].mxu1 %vm471_vm1, %v71_v58 }
  0x62   :  { %917 = vmatprep.mubr.msk.bf16.mxu1 %vm1086_vm0, %v1085_v44  ;;  %902 = vmatpush3.bf16.msra.mxu1 %v978_v0 }
  0x63   :  { %903 = vmatprep.subr.bf16.mxu1 %v1085_v44 }
  0x64   :  { %869 = vmatpush3.bf16.msra.mxu0 %v968_v48 }
  0x65   :  { %870 = vmatprep.subr.bf16.mxu0 %v969_v49 }
  0x66   :  { %904 = vmatpush3.bf16.msra.mxu1 %v979_v1 }
  0x67   :  { %905 = vmatprep.subr.bf16.mxu1 %v1085_v44 }
  0x68   :  { %871 = vmatpush3.bf16.msra.mxu0 %v970_v50 }
  0x69   :  { %872 = vmatprep.subr.bf16.mxu0 %v971_v51 }
  0x6a   :  { %906 = vmatpush3.bf16.msra.mxu1 %v980_v2 }
  0x6b   :  { %907 = vmatprep.subr.bf16.mxu1 %v1085_v44 }
  0x6c   :  { %873 = vmatpush3.bf16.msra.mxu0 %v972_v52 }
  0x6d   :  { %874 = vmatprep.subr.bf16.mxu0 %v973_v55 }
  0x6e   :  { %908 = vmatpush3.bf16.msra.mxu1 %v981_v3 }
  0x6f   :  { %909 = vmatprep.subr.bf16.mxu1 %v1085_v44 }
  0x70   :  { %875 = vmatpush3.bf16.msra.mxu0 %v974_v59 }
  0x71   :  { %876 = vmatprep.subr.bf16.mxu0 %v975_v60 }
  0x72   :  { %910 = vmatpush3.bf16.msra.mxu1 %v982_v4 }
  0x73   :  { %911 = vmatprep.subr.bf16.mxu1 %v1085_v44 }
  0x74   :  { %877 = vmatpush3.bf16.msra.mxu0 %v976_v61 }
  0x76   :  { %912 = vmatpush3.bf16.msra.mxu1 %v983_v5 }
  0x77   :  { %588 = vmatmul.mubr.bf16.vlgmr.msra.gmra.mrb[4].mxu0 %v69_v63  ;;  %913 = vmatprep.subr.bf16.mxu1 %v1085_v44 }
  0x7a   :  { %914 = vmatpush3.bf16.msra.mxu1 %v984_v6 }
  0x7b   :  { %915 = vmatprep.subr.bf16.mxu1 %v1085_v44 }
  0x7e   :  { %916 = vmatpush3.bf16.msra.mxu1 %v985_v7 }
 0x12a   :  { %v834_v8 = vpop.f32.mrb[0].mxu0 }
 0x12b   :  { %v835_v10 = vpop.f32.mrb[1].mxu0 }
 0x12c   :  { %v836_v11 = vadd.f32 %v835_v10, %v834_v8  ;;  %v837_v12 = vpop.f32.mrb[2].mxu0  ;;  %v856_v13 = vpop.f32.mrb[0].mxu1 }
 0x12d   :  { %v838_v14 = vpop.f32.mrb[3].mxu0  ;;  %v857_v16 = vpop.f32.mrb[1].mxu1 }
 0x12e   :  { %v510_v15 = vadd.f32 %v836_v11, %v759_v9  ;;  %v858_v17 = vadd.f32 %v857_v16, %v856_v13  ;;  %v859_v18 = vpop.f32.mrb[2].mxu1 }
 0x12f   :  { %v860_v19 = vpop.f32.mrb[3].mxu1 }
 0x130   :  { %v550_v20 = vadd.f32 %v858_v17, %v510_v15 }
 0x134   :  { %v629_v21 = vpop.f32.mrb[4].mxu1 }
 0x135   :  { %v899_v22 = vpop.f32.mrb[5].mxu1 }
 0x136   :  { %v632_v23 = vpop.f32.mrb[6].mxu1 }
 0x137   :  { %v900_v24 = vpop.f32.mrb[7].mxu1 }
 0x14a   :  { %v878_v25 = vpop.f32.mrb[4].mxu0 }
 0x14b   :  { %v879_v26 = vpop.f32.mrb[5].mxu0 }
 0x14c   :  { %v880_v27 = vadd.f32 %v879_v26, %v878_v25  ;;  %v881_v28 = vpop.f32.mrb[6].mxu0 }
 0x14d   :  { %v882_v29 = vpop.f32.mrb[7].mxu0 }
 0x14e   :  { %v590_v30 = vadd.f32 %v880_v27, %v550_v20 }
 0x150   :  { %v630_v31 = vadd.f32 %v629_v21, %v590_v30 }
 0x152   :  { %v635_v32 = vmax.f32 %v630_v31, 0.0 }
 0x154   :  { %v636_v33 = vpack.c.bf16 %v635_v32, %v635_v32 }
 0x156   :  { %918 = vmatmul.mubr.bf16.vlgmr.msra.gmra.mrb[8].mxu1 %v636_v33 }
 0x229   :  { %v735_v34 = vpop.f32.mrb[8].mxu1 }
 0x22a   :  { %v741_v35 = vpack.c.bf16 %v735_v34, %v735_v34  ;;  %v919_v36 = vpop.f32.mrb[9].mxu1 }
 0x22b   :  { %v738_v37 = vpop.f32.mrb[10].mxu1 }
 0x22c   :  { %742 = vst [vmem:[#allocation8] sm:$0xf] %v741_v35  ;;  %v920_v38 = vpop.f32.mrb[11].mxu1 }
 0x22d   :  { %1063 = shalt.err (!%p1060_p0)
}
 0x22e   :  { %s1064_s30 = scalar_lea.hbm %s1187_s4, 64 }
 0x22f   :  { %p1065_p1 = scmp.ne.s32.totalorder %s1187_s4, %s1064_s30  ;;  %p1068_p2 = scmp.lt.u32.totalorder %s1064_s30, %s1187_s4 }
 0x231   :  { %p1070_p3 = pnand %p1068_p2, %p1065_p1 }
 0x233   :  { %1073 = shalt.err (!%p1070_p3)
}
 0x234   :  { %752 = dma.vmem_to_hbm [thread:$0]  %s750_s26, 64, %s1187_s4, [#allocation4]  }
 0x235   :  { %1078 = dma.done.wait [#allocation4], 64  }
 0x236   :  { %1079 = vsyncadd [#allocation4], 4294967232 }
 0x237   :  { %756 = vsyncpa [#allocation3], 1 }
 0x238   :  { %757 = vsyncpa [#allocation6], 1 }
 0x239   :  { %758 = vsyncpa [#allocation4], 1 }

</bundles_post_ra>
